<compile_context>
chip_gen: v7x
topology: tpu7x:2x2x1
jax: 0.10.0
libtpu: 0.0.40
codegen_flags: <defaults>
</compile_context>

<pallas_src>
import functools

import jax
import jax.numpy as jnp
from jax.experimental import pallas as pl
from jax.experimental.pallas import tpu as pltpu

_IN_FEATURES = 140
_OUT_FEATURES = 5
_PALLAS_MIN_BATCH = 512  # below this, fused XLA wins over kernel launch cost


def _linear_kernel(x_ref, w_ref, b_ref, o_ref):
    # Hot path: one MXU matmul on the (TB, 140) batch tile + bias broadcast.
    acc = jnp.dot(x_ref[...], w_ref[...], preferred_element_type=jnp.float32)
    o_ref[...] = (acc + b_ref[...]).astype(o_ref.dtype)


def _round_up(n, m):
    return ((n + m - 1) // m) * m


@functools.partial(jax.jit, static_argnames=("tb",))
def classifier_forward_pallas(x2d, w_t, b2d, *, tb=512):
    """x2d: (B, 140) activations; w_t: (140, 5) pre-transposed weight; b2d: (1, 5)."""
    B, K = x2d.shape
    assert K == _IN_FEATURES and w_t.shape == (_IN_FEATURES, _OUT_FEATURES)

    # Batch tile: multiple of 8 sublanes, capped at `tb`; Pallas pads the
    # (single) partial trailing block when B is not a multiple of TB.
    TB = min(tb, max(8, _round_up(B, 8)))
    grid = (pl.cdiv(B, TB),)

    flops = 2 * B * K * _OUT_FEATURES
    bytes_accessed = 4 * (B * K + K * _OUT_FEATURES + B * _OUT_FEATURES)

    return pl.pallas_call(
        _linear_kernel,
        out_shape=jax.ShapeDtypeStruct((B, _OUT_FEATURES), x2d.dtype),
        grid=grid,
        in_specs=[
            pl.BlockSpec((TB, K), lambda i: (i, 0)),                 # x tile
            pl.BlockSpec((K, _OUT_FEATURES), lambda i: (0, 0)),      # weight (resident)
            pl.BlockSpec((1, _OUT_FEATURES), lambda i: (0, 0)),      # bias (resident)
        ],
        out_specs=pl.BlockSpec((TB, _OUT_FEATURES), lambda i: (i, 0)),
        compiler_params=pltpu.CompilerParams(
            dimension_semantics=("parallel",),       # megacore sharding on v7x
            vmem_limit_bytes=32 * 1024 * 1024,       # safe on v5e/v6e/v7x
        ),
        cost_estimate=pl.CostEstimate(
            flops=flops, transcendentals=0, bytes_accessed=bytes_accessed
        ),
    )(x2d, w_t, b2d)


def classifier_forward(x, weight, bias):
    """Full module: Flatten + Linear(140 -> 5). weight: (5, 140), bias: (5,)."""
    B = x.shape[0]
    x2d = x.reshape(B, -1)  # Flatten (pure glue, done in JAX)
    assert x2d.shape[1] == _IN_FEATURES
    # NOTE: in a real model store the weight pre-transposed / bias reshaped at
    # init time; done here once per call only to keep the PyTorch param layout.
    w_t = weight.T
    b2d = bias.reshape(1, -1)
    if B < _PALLAS_MIN_BATCH:
        # Tiny batch: ~1.4k FLOPs — fused XLA beats any custom-kernel launch.
        return x2d @ w_t + b2d
    return classifier_forward_pallas(x2d, w_t, b2d)


def _reference(x, weight, bias):
    return x.reshape(x.shape[0], -1) @ weight.T + bias


if __name__ == "__main__":
    key = jax.random.PRNGKey(0)
    kx, kw, kb, kx2 = jax.random.split(key, 4)

    # Parameters mimicking nn.Linear default init: U[-1/sqrt(in), 1/sqrt(in)].
    bound = 1.0 / jnp.sqrt(float(_IN_FEATURES))
    weight = jax.random.uniform(kw, (_OUT_FEATURES, _IN_FEATURES), jnp.float32, -bound, bound)
    bias = jax.random.uniform(kb, (_OUT_FEATURES,), jnp.float32, -bound, bound)
    w_t = weight.T
    b2d = bias.reshape(1, -1)

    # Small example consistent with the module: (batch=2, 4, 35) -> (2, 140).
    x_small = jax.random.normal(kx, (2, 4, 35), dtype=jnp.float32)
    y_small = classifier_forward_pallas(x_small.reshape(2, -1), w_t, b2d)
    jax.block_until_ready(y_small)
    assert y_small.shape == (2, _OUT_FEATURES)
    assert jnp.allclose(y_small, _reference(x_small, weight, bias), atol=1e-5, rtol=1e-5)

    # Larger batch to exercise the multi-step, double-buffered batch grid
    # (B=2048, TB=512 -> 4 grid steps; still only ~1.1 MiB of activations).
    x_big = jax.random.normal(kx2, (2048, _IN_FEATURES), dtype=jnp.float32)
    y_big = classifier_forward_pallas(x_big, w_t, b2d)
    jax.block_until_ready(y_big)
    assert y_big.shape == (2048, _OUT_FEATURES)
    assert jnp.allclose(y_big, _reference(x_big, weight, bias), atol=1e-5, rtol=1e-5)

    # Dispatcher path (tiny batch -> fused XLA) stays numerically identical.
    y_disp = classifier_forward(x_small, weight, bias)
    assert jnp.allclose(y_disp, y_small, atol=1e-5, rtol=1e-5)

    print("KERNEL_OK")
</pallas_src>

<mosaic_0001>
module attributes {stable_mosaic.version = 11 : i64} {
  func.func @_linear_kernel(%arg0: i32, %arg1: memref<8x140xf32, #tpu.memory_space<vmem>>, %arg2: memref<140x5xf32, #tpu.memory_space<vmem>>, %arg3: memref<1x5xf32, #tpu.memory_space<vmem>>, %arg4: memref<8x5xf32, #tpu.memory_space<vmem>>) attributes {dimension_semantics = [#tpu.dimension_semantics<parallel>], iteration_bounds = array<i64: 1>, scalar_prefetch = 0 : i64, scratch_operands = 0 : i64, tpu.core_type = #tpu.core_type<tc>, window_params = [{transform_indices = @transform_0, window_bounds = array<i64: 8, 140>}, {pipeline_mode = #tpu.pipeline_mode<synchronous>, transform_indices = @transform_1, window_bounds = array<i64: 140, 5>}, {pipeline_mode = #tpu.pipeline_mode<synchronous>, transform_indices = @transform_2, window_bounds = array<i64: 1, 5>}, {transform_indices = @transform_3, window_bounds = array<i64: 8, 5>}]} {
    %c0 = arith.constant 0 : index
    %c0_0 = arith.constant 0 : index
    %0 = vector.load %arg1[%c0, %c0_0] : memref<8x140xf32, #tpu.memory_space<vmem>>, vector<8x140xf32>
    %c0_1 = arith.constant 0 : index
    %c0_2 = arith.constant 0 : index
    %1 = vector.load %arg2[%c0_1, %c0_2] : memref<140x5xf32, #tpu.memory_space<vmem>>, vector<140x5xf32>
    %cst = arith.constant dense<0.000000e+00> : vector<8x5xf32>
    %2 = tpu.matmul %0, %1, %cst {dimension_numbers = #tpu.dot_dimension_numbers<[1], [0], [0], [1], [0, 0, 1, 1], [], []>} : vector<8x140xf32>, vector<140x5xf32>, vector<8x5xf32> -> vector<8x5xf32>
    %c0_3 = arith.constant 0 : index
    %c0_4 = arith.constant 0 : index
    %3 = vector.load %arg3[%c0_3, %c0_4] : memref<1x5xf32, #tpu.memory_space<vmem>>, vector<1x5xf32>
    %4 = vector.broadcast %3 : vector<1x5xf32> to vector<8x5xf32>
    %5 = arith.addf %2, %4 : vector<8x5xf32>
    %c0_5 = arith.constant 0 : index
    %c0_6 = arith.constant 0 : index
    %6 = vector.load %arg4[%c0_5, %c0_6] : memref<8x5xf32, #tpu.memory_space<vmem>>, vector<8x5xf32>
    tpu.vector_store %arg4[%c0_5, %c0_6], %5 {strides = array<i32>} : memref<8x5xf32, #tpu.memory_space<vmem>>, vector<8x5xf32>,
    return
  }
  func.func @transform_0(%arg0: i32) -> (i32, i32) {
    %c0_i32 = arith.constant 0 : i32
    %c0_i32_0 = arith.constant 0 : i32
    return %arg0, %c0_i32 : i32, i32
  }
  func.func @transform_1(%arg0: i32) -> (i32, i32) {
    %c0_i32 = arith.constant 0 : i32
    %c0_i32_0 = arith.constant 0 : i32
    %c0_i32_1 = arith.constant 0 : i32
    return %c0_i32, %c0_i32_0 : i32, i32
  }
  func.func @transform_2(%arg0: i32) -> (i32, i32) {
    %c0_i32 = arith.constant 0 : i32
    %c0_i32_0 = arith.constant 0 : i32
    %c0_i32_1 = arith.constant 0 : i32
    return %c0_i32, %c0_i32_0 : i32, i32
  }
  func.func @transform_3(%arg0: i32) -> (i32, i32) {
    %c0_i32 = arith.constant 0 : i32
    %c0_i32_0 = arith.constant 0 : i32
    return %arg0, %c0_i32 : i32, i32
  }
}

</mosaic_0001>

<bundles_post_ra>
// kernel: classifier_forward_pallas.1
= control target key start
LH: loop header
LB: loop body
LE: loop exit
PB: predicated region body
PF: predicated region fallthrough
CT: control target
= control target key end

     0   :  { %8 = vsyncpa [#allocation3], 0  ;;  %v227_v2 = vmov 0.0|0.0   ;;  %vm67_vm0 = vcmask 97280   ;;  %vm70_vm1 = vcmask 1043456   ;;  %vm228_vm2 = vmmov 1   ;;  %s327_s0 = inlined_call_operand.vmem [shape: f32[2,140], index: 0, kind: input, shape index: {}]   ;;  %s328_s1 = inlined_call_operand.vmem [shape: f32[140,5], index: 1, kind: input, shape index: {}]   ;;  %s329_s2 = inlined_call_operand.vmem [shape: f32[1,5], index: 2, kind: input, shape index: {}]   ;;  %s330_s3 = inlined_call_operand.hbm [shape: f32[2,5], index: 3, kind: output, shape index: {}]  }
   0x1   :  { %v19_v0 = vld [vmem:[%s328_s1] sm:$0xff]  ;;  %v20_v1 = vld [vmem:[%s328_s1 + $0x8] sm:$0xff]  ;;  %165 = vmatprep.subr.bf16.mxu0 %v227_v2  ;;  %v21_v4 = vld [vmem:[%s328_s1 + $0x10] sm:$0xff]  ;;  %vm144_vm4 = vcmask 39936  }
   0x2   :  { %v166_v3 = vpack.c.bf16 %v20_v1, %v19_v0  ;;  %v22_v5 = vld [vmem:[%s328_s1 + $0x18] sm:$0xff]  ;;  %v23_v7 = vld [vmem:[%s328_s1 + $0x20] sm:$0xff]  ;;  %v24_v8 = vld [vmem:[%s328_s1 + $0x28] sm:$0xff] }
   0x3   :  { %v169_v6 = vpack.c.bf16 %v22_v5, %v21_v4  ;;  %v25_v9 = vld [vmem:[%s328_s1 + $0x30] sm:$0xff]  ;;  %v172_v10 = vpack.c.bf16 %v24_v8, %v23_v7  ;;  %v26_v11 = vld [vmem:[%s328_s1 + $0x38] sm:$0xff]  ;;  %v201_v12 = vld.sshfl [vmem:[%s327_s0] sm:$0xff pattern:$0x76325410] }
   0x4   :  { %167 = vmatpush1.bf16.msra.mxu0 %v166_v3  ;;  %v202_v13 = vld.sshfl [vmem:[%s327_s0 + $0x8] sm:$0xff pattern:$0x76325410]  ;;  %v175_v14 = vpack.c.bf16 %v26_v11, %v25_v9  ;;  %v27_v15 = vld [vmem:[%s328_s1 + $0x40] sm:$0xff]  ;;  %v29_v19 = vld [vmem:[%s328_s1 + $0x50] sm:$0xff] }
   0x5   :  { %168 = vmatprep.subr.bf16.mxu0 %v227_v2  ;;  %v28_v16 = vld [vmem:[%s328_s1 + $0x48] sm:$0xff]  ;;  %v65_v17 = vcombine.high %v201_v12, %v202_v13  ;;  %v30_v20 = vld [vmem:[%s328_s1 + $0x58] sm:$0xff]  ;;  %v31_v22 = vld [vmem:[%s328_s1 + $0x60] sm:$0xff]  ;;  %v64_v31 = vcombine.low %v201_v12, %v202_v13 }
   0x6   :  { %v178_v18 = vpack.c.bf16 %v28_v16, %v27_v15  ;;  %v181_v21 = vpack.c.bf16 %v30_v20, %v29_v19  ;;  %v32_v23 = vld [vmem:[%s328_s1 + $0x68] sm:$0xff]  ;;  %v33_v25 = vld [vmem:[%s328_s1 + $0x70] sm:$0xff]  ;;  %v34_v26 = vld [vmem:[%s328_s1 + $0x78] sm:$0xff] }
   0x7   :  { %164 = vmatprep.mubr.msk.f32.mxu0 %vm67_vm0, %v65_v17  ;;  %v184_v24 = vpack.c.bf16 %v32_v23, %v31_v22  ;;  %v187_v27 = vpack.c.bf16 %v34_v26, %v33_v25  ;;  %v35_v28 = vld [vmem:[%s328_s1 + $0x80] sm:$0xff]  ;;  %v36_v29 = vld [vmem:[%s328_s1 + $0x88] sm:$0xf]  ;;  %vm191_vm3 = vmpackc.low %vm70_vm1, %vm228_vm2 }
   0x8   :  { %170 = vmatpush1.bf16.msra.mxu0 %v169_v6  ;;  %v190_v30 = vpack.c.bf16 %v36_v29, %v35_v28  ;;  %v162_v32 = vld [vmem:[%s329_s2] ss:$0 sm:$0xff] }
   0x9   :  { %171 = vmatprep.subr.bf16.mxu0 %v227_v2 }
   0xc   :  { %173 = vmatpush1.bf16.msra.mxu0 %v172_v10 }
   0xd   :  { %174 = vmatprep.subr.bf16.mxu0 %v227_v2 }
  0x10   :  { %176 = vmatpush1.bf16.msra.mxu0 %v175_v14 }
  0x11   :  { %177 = vmatprep.subr.bf16.mxu0 %v227_v2 }
  0x14   :  { %179 = vmatpush1.bf16.msra.mxu0 %v178_v18 }
  0x15   :  { %180 = vmatprep.subr.bf16.mxu0 %v227_v2 }
  0x18   :  { %182 = vmatpush1.bf16.msra.mxu0 %v181_v21 }
  0x19   :  { %183 = vmatprep.subr.bf16.mxu0 %v227_v2 }
  0x1c   :  { %185 = vmatpush1.bf16.msra.mxu0 %v184_v24 }
  0x1d   :  { %186 = vmatprep.subr.bf16.mxu0 %v227_v2 }
  0x20   :  { %188 = vmatpush1.bf16.msra.mxu0 %v187_v27 }
  0x21   :  { %189 = vmatprep.subr.bf16.mxu0 %v227_v2 }
  0x24   :  { %192 = vmatpush1.bf16.msk.msra.mxu0 %vm191_vm3, %v190_v30 }
  0x27   :  { %139 = vmatmul.mubr.f32.vlgmr.msra.gmra.mrb[0].mxu0 %v64_v31 }
  0xfa   :  { %v140_v33 = vpop.f32.mrb[0].mxu0 }
  0xfb   :  { %v141_v34 = vadd.f32 %v162_v32, %v140_v33  ;;  %v142_v35 = vpop.f32.mrb[1].mxu0 }
  0xfd   :  { %145 = vst.msk [vmem:[#allocation2] sm:$0xff] %vm144_vm4, %v141_v34 }
  0xfe   :  { %150 = vsyncadd [#allocation3], 96  ;;  %s229_s1 = smov [#allocation2]  }
  0xff   :  { %s151_s26 = sshll.u32 %s229_s1, 4  ;;  %s152_s26 = int_to_ptr.vmem [resolvable:$true] %s151_s26 }
 0x100   :  { %s203_s27 = scalar_lea.vmem %s152_s26, 32  ;;  %s207_s28 = scalar_lea.vmem %s152_s26, 128 }
 0x101   :  { %p204_p0 = scmp.ne.s32.totalorder %s152_s26, %s203_s27  ;;  %p208_p1 = scmp.lt.s32.totalorder %s152_s26, %s152_s26 }
 0x102   :  { %p209_p2 = scmp.lt.s32.totalorder %s207_s28, %s203_s27 }
 0x104   :  { %p210_p3 = por %p209_p2, %p208_p1 }
 0x106   :  { %p211_p4 = pnand %p210_p3, %p204_p0 }
 0x108   :  { %214 = shalt.err (!%p211_p4)
}
 0x109   :  { %s215_s2 = scalar_lea.hbm %s330_s3, 32 }
 0x10a   :  { %p216_p5 = scmp.ne.s32.totalorder %s330_s3, %s215_s2  ;;  %p219_p6 = scmp.lt.u32.totalorder %s215_s2, %s330_s3 }
 0x10c   :  { %p221_p7 = pnand %p219_p6, %p216_p5 }
 0x10e   :  { %224 = shalt.err (!%p221_p7)
}
 0x10f   :  { %s230_s8 = smov 32   ;;  %s231_s9 = smov 2  }
 0x110   :  { %157 = dma.vmem_to_hbm [thread:$0]  %s152_s26, 32, %s330_s3, [#allocation3], %s230_s8, %s230_s8, %s231_s9  }
 0x111   :  { %225 = dma.done.wait [#allocation3], 128  }
 0x112   :  { %226 = vsyncadd [#allocation3], 4294967168 }
 0x113   :  { %161 = vsyncpa [#allocation3], 1 }

</bundles_post_ra>
